<compile_context>
chip_gen: v7x
topology: tpu7x:2x2x1
jax: 0.10.0
libtpu: 0.0.40
codegen_flags: <defaults>
</compile_context>

<pallas_src>
import functools

import jax
import jax.numpy as jnp
from jax import lax
from jax.experimental import pallas as pl
from jax.experimental.pallas import tpu as pltpu

LANES = 128            # vreg lane width (last-dim tile)
SUBLANES = 8           # f32 sublane tile
MAX_BLOCK_ROWS = 8192  # (8192, 128) f32 tile = 4 MiB per input per pipeline buffer


def _tensorcores_per_chip() -> int:
    """2 for megacore chips (v4 / v5p / v7x), else 1. Perf hint only."""
    try:
        kind = jax.devices()[0].device_kind.lower()
    except Exception:
        return 1
    return 2 if any(tag in kind for tag in ("v4", "v5p", "v7", "7x")) else 1


def _f1_partials_kernel(pred_ref, gt_ref, out_tp_ref, out_pg_ref,
                        acc_tp, acc_pg, *, n_inner, block_rows, valid_rows,
                        may_be_partial):
    """Accumulate (8,128) partials of tp = pb*g and pg = pb+g over the inner
    (reduction) grid axis; dump raw partials at the last inner step."""
    o = pl.program_id(0)   # "parallel" streaming shard (megacore-friendly)
    i = pl.program_id(1)   # "arbitrary" reduction axis

    @pl.when(i == 0)
    def _init():
        acc_tp[...] = jnp.zeros_like(acc_tp)
        acc_pg[...] = jnp.zeros_like(acc_pg)

    # Stream inputs in native dtype; compare / cast in-register.
    pred_pos = pred_ref[...] > 0.5        # torchmetrics uses strict '>' vs 0.5
    g = gt_ref[...].astype(jnp.float32)

    def _accumulate(pos, gv):
        tp = jnp.where(pos, gv, 0.0)        # pb * g
        pg = jnp.where(pos, gv + 1.0, gv)   # pb + g
        # (8,128)-aligned, layout-preserving fold: pure VPU vreg adds; the
        # accumulator itself stays a single (8,128) tile in VMEM.
        acc_tp[...] += tp.reshape(block_rows // SUBLANES, SUBLANES, LANES).sum(axis=0)
        acc_pg[...] += pg.reshape(block_rows // SUBLANES, SUBLANES, LANES).sum(axis=0)

    if may_be_partial:
        # Virtual (unclamped) block index -> first global row of this tile.
        base_row = (o * n_inner + i) * block_rows

        @pl.when(base_row + block_rows <= valid_rows)
        def _full_tile():                      # fast path: no masking work
            _accumulate(pred_pos, g)

        @pl.when(base_row + block_rows > valid_rows)
        def _partial_tile():                   # partial last / clamped overshoot block
            row_ids = base_row + lax.broadcasted_iota(
                jnp.int32, (block_rows, LANES), 0)
            valid = row_ids < valid_rows
            _accumulate(jnp.logical_and(valid, pred_pos),
                        jnp.where(valid, g, 0.0))
    else:
        _accumulate(pred_pos, g)

    @pl.when(i == pl.num_programs(1) - 1)
    def _finalize():
        out_tp_ref[...] = acc_tp[...].reshape(1, SUBLANES, LANES)
        out_pg_ref[...] = acc_pg[...].reshape(1, SUBLANES, LANES)


def _counts_jax(pred_vals, gt_vals):
    """Tiny pure-JAX (tp, pb+gt) for tails / sub-1024-element inputs."""
    pos = pred_vals > 0.5
    gf = gt_vals.astype(jnp.float32)
    tp = jnp.sum(jnp.where(pos, gf, 0.0))
    pg = jnp.sum(pos.astype(jnp.float32) + gf)
    return tp, pg


def _f1_from_counts(tp, pg):
    # pg = sum(pb) + sum(gt) = 2*tp + fp + fn
    return jnp.where(pg > 0.0, 2.0 * tp / pg, jnp.float32(0.0))


def fscore(pred: jax.Array, gt: jax.Array) -> jax.Array:
    """Binary F1 score of pred vs gt (any matching shapes), returns scalar f32."""
    pred_flat = pred.reshape(-1)
    gt_flat = gt.reshape(-1)
    n = pred_flat.shape[0]
    rows = n // LANES
    n_aligned = rows * LANES

    # <128-element tail: fold into the epilogue instead of padding O(n) arrays.
    if n_aligned < n:
        tail_tp, tail_pg = _counts_jax(pred_flat[n_aligned:], gt_flat[n_aligned:])
    else:
        tail_tp = jnp.float32(0.0)
        tail_pg = jnp.float32(0.0)

    if rows < SUBLANES:
        # Fewer than 1024 elements: not worth a kernel launch.
        if rows > 0:
            h_tp, h_pg = _counts_jax(pred_flat[:n_aligned], gt_flat[:n_aligned])
            tail_tp = tail_tp + h_tp
            tail_pg = tail_pg + h_pg
        return _f1_from_counts(tail_tp, tail_pg)

    pred2d = pred_flat[:n_aligned].reshape(rows, LANES)
    gt2d = gt_flat[:n_aligned].reshape(rows, LANES)

    # Block rows: multiple of 32 (safe for f32/bf16/i8/bool tiles) when possible,
    # never larger than the array dim, capped by MAX_BLOCK_ROWS.
    if rows >= 32:
        block_rows = min(MAX_BLOCK_ROWS, (rows // 32) * 32)
    else:
        block_rows = (rows // SUBLANES) * SUBLANES
    total_blocks = -(-rows // block_rows)

    # 2-way outer split only where it maps onto a second TensorCore.
    n_outer = 2 if (_tensorcores_per_chip() >= 2 and total_blocks >= 2) else 1
    n_inner = -(-total_blocks // n_outer)
    overshoot = (n_outer * n_inner) != total_blocks
    may_be_partial = (rows % block_rows != 0) or overshoot

    def in_index_map(o, i):
        b = o * n_inner + i
        if overshoot:
            # Clamp duplicate trailing virtual blocks; kernel masks them to zero.
            b = jnp.minimum(b, total_blocks - 1)
        return (b, 0)

    kernel = functools.partial(
        _f1_partials_kernel,
        n_inner=n_inner,
        block_rows=block_rows,
        valid_rows=rows,
        may_be_partial=may_be_partial,
    )

    # 2 inputs x 2 pipeline buffers x tile bytes (+ headroom for outputs/scratch).
    in_bytes = 2 * block_rows * LANES * (pred2d.dtype.itemsize + gt2d.dtype.itemsize)
    vmem_limit = int(in_bytes) + (8 << 20)

    out_struct = jax.ShapeDtypeStruct((n_outer, SUBLANES, LANES), jnp.float32)
    tp_parts, pg_parts = pl.pallas_call(
        kernel,
        out_shape=(out_struct, out_struct),
        grid_spec=pltpu.PrefetchScalarGridSpec(
            num_scalar_prefetch=0,
            grid=(n_outer, n_inner),
            in_specs=[
                pl.BlockSpec((block_rows, LANES), in_index_map),
                pl.BlockSpec((block_rows, LANES), in_index_map),
            ],
            out_specs=[
                pl.BlockSpec((1, SUBLANES, LANES), lambda o, i: (o, 0, 0)),
                pl.BlockSpec((1, SUBLANES, LANES), lambda o, i: (o, 0, 0)),
            ],
            scratch_shapes=[
                pltpu.VMEM((SUBLANES, LANES), jnp.float32),
                pltpu.VMEM((SUBLANES, LANES), jnp.float32),
            ],
        ),
        compiler_params=pltpu.CompilerParams(
            dimension_semantics=("parallel", "arbitrary"),
            vmem_limit_bytes=vmem_limit,
        ),
    )(pred2d, gt2d)

    # Tiny epilogue: combine per-core / per-lane partials and form F1.
    tp = jnp.sum(tp_parts) + tail_tp
    denom = jnp.sum(pg_parts) + tail_pg
    return _f1_from_counts(tp, denom)


def _reference_f1(pred, gt):
    """Pure-JAX reference mirroring torchmetrics binary F1."""
    p = (pred.reshape(-1) > 0.5).astype(jnp.float32)
    g = gt.reshape(-1).astype(jnp.float32)
    tp = jnp.sum(p * g)
    fp = jnp.sum(p * (1.0 - g))
    fn = jnp.sum((1.0 - p) * g)
    denom = 2.0 * tp + fp + fn
    return jnp.where(denom > 0.0, 2.0 * tp / denom, 0.0)


if __name__ == "__main__":
    key = jax.random.PRNGKey(0)
    k_pred, k_gt = jax.random.split(key)

    # Primary small-shape run (NCHW, as the PyTorch module expects).
    B, C, H, W = 2, 4, 16, 16
    pred = jax.random.uniform(k_pred, (B, C, H, W), dtype=jnp.float32)
    gt = jax.random.bernoulli(k_gt, p=0.5, shape=(B, C, H, W)).astype(jnp.float32)
    f1 = jax.block_until_ready(fscore(pred, gt))
    ref = jax.block_until_ready(_reference_f1(pred, gt))
    assert jnp.allclose(f1, ref, atol=1e-6), (f1, ref)

    # Tiny ragged size (<1024 elements, not a multiple of 128): epilogue path.
    k1, k2 = jax.random.split(k_pred)
    pred_r = jax.random.uniform(k1, (2, 3, 7, 11), dtype=jnp.float32)
    gt_r = jax.random.bernoulli(k2, p=0.5, shape=(2, 3, 7, 11)).astype(jnp.float32)
    f1_r = jax.block_until_ready(fscore(pred_r, gt_r))
    ref_r = jax.block_until_ready(_reference_f1(pred_r, gt_r))
    assert jnp.allclose(f1_r, ref_r, atol=1e-6), (f1_r, ref_r)

    # Mid-size ragged f32: multi-block reduction, masked partial block + <128 tail.
    k3, k4 = jax.random.split(k_gt)
    pred_m = jax.random.uniform(k3, (38450,), dtype=jnp.float32)
    gt_m = jax.random.bernoulli(k4, p=0.5, shape=(38450,)).astype(jnp.float32)
    f1_m = jax.block_until_ready(fscore(pred_m, gt_m))
    ref_m = jax.block_until_ready(_reference_f1(pred_m, gt_m))
    assert jnp.allclose(f1_m, ref_m, atol=1e-6), (f1_m, ref_m)

    # Large multi-block run streaming narrow dtypes (bf16 preds, int8 labels):
    # 8192-row tiles, masked partial block, and (on megacore chips) the 2-way
    # parallel split with a clamped overshoot block.
    k5, k6 = jax.random.split(k3)
    pred_b = jax.random.uniform(k5, (1, 1, 20000, 128),
                                dtype=jnp.float32).astype(jnp.bfloat16)
    gt_b = jax.random.bernoulli(k6, p=0.3, shape=(1, 1, 20000, 128)).astype(jnp.int8)
    f1_b = jax.block_until_ready(fscore(pred_b, gt_b))
    ref_b = jax.block_until_ready(_reference_f1(pred_b, gt_b))
    assert jnp.allclose(f1_b, ref_b, atol=1e-6), (f1_b, ref_b)

    print("KERNEL_OK")
</pallas_src>

<mosaic_0001>
module attributes {stable_mosaic.version = 11 : i64} {
  func.func @_f1_partials_kernel(%arg0: i32, %arg1: i32, %arg2: memref<16x128xf32, #tpu.memory_space<vmem>>, %arg3: memref<16x128xf32, #tpu.memory_space<vmem>>, %arg4: memref<1x8x128xf32, #tpu.memory_space<vmem>>, %arg5: memref<1x8x128xf32, #tpu.memory_space<vmem>>, %arg6: memref<8x128xf32, #tpu.memory_space<vmem>>, %arg7: memref<8x128xf32, #tpu.memory_space<vmem>>) attributes {dimension_semantics = [#tpu.dimension_semantics<parallel>, #tpu.dimension_semantics<arbitrary>], iteration_bounds = array<i64: 1, 1>, scalar_prefetch = 0 : i64, scratch_operands = 2 : i64, tpu.core_type = #tpu.core_type<tc>, window_params = [{transform_indices = @transform_0, window_bounds = array<i64: 16, 128>}, {transform_indices = @transform_1, window_bounds = array<i64: 16, 128>}, {transform_indices = @transform_2, window_bounds = array<i64: 1, 8, 128>}, {transform_indices = @transform_3, window_bounds = array<i64: 1, 8, 128>}]} {
    %c0_i32 = arith.constant 0 : i32
    %0 = arith.cmpi eq, %arg1, %c0_i32 : i32
    %1 = arith.extui %0 : i1 to i32
    %c0_i32_0 = arith.constant 0 : i32
    %2 = arith.cmpi ne, %1, %c0_i32_0 : i32
    scf.if %2 {
      %cst_18 = arith.constant 0.000000e+00 : f32
      %25 = vector.broadcast %cst_18 : f32 to vector<8x128xf32>
      %c0_19 = arith.constant 0 : index
      %c0_20 = arith.constant 0 : index
      %26 = vector.load %arg6[%c0_19, %c0_20] : memref<8x128xf32, #tpu.memory_space<vmem>>, vector<8x128xf32>
      tpu.vector_store %arg6[%c0_19, %c0_20], %25 {strides = array<i32>} : memref<8x128xf32, #tpu.memory_space<vmem>>, vector<8x128xf32>,
      %cst_21 = arith.constant 0.000000e+00 : f32
      %27 = vector.broadcast %cst_21 : f32 to vector<8x128xf32>
      %c0_22 = arith.constant 0 : index
      %c0_23 = arith.constant 0 : index
      %28 = vector.load %arg7[%c0_22, %c0_23] : memref<8x128xf32, #tpu.memory_space<vmem>>, vector<8x128xf32>
      tpu.vector_store %arg7[%c0_22, %c0_23], %27 {strides = array<i32>} : memref<8x128xf32, #tpu.memory_space<vmem>>, vector<8x128xf32>,
    } else {
    }
    %c0 = arith.constant 0 : index
    %c0_1 = arith.constant 0 : index
    %3 = vector.load %arg2[%c0, %c0_1] : memref<16x128xf32, #tpu.memory_space<vmem>>, vector<16x128xf32>
    %cst = arith.constant 5.000000e-01 : f32
    %4 = vector.broadcast %cst : f32 to vector<16x128xf32>
    %5 = arith.cmpf ogt, %3, %4 : vector<16x128xf32>
    %c0_2 = arith.constant 0 : index
    %c0_3 = arith.constant 0 : index
    %6 = vector.load %arg3[%c0_2, %c0_3] : memref<16x128xf32, #tpu.memory_space<vmem>>, vector<16x128xf32>
    %cst_4 = arith.constant 0.000000e+00 : f32
    %7 = vector.broadcast %cst_4 : f32 to vector<16x128xf32>
    %8 = arith.select %5, %6, %7 : vector<16x128xi1>, vector<16x128xf32>
    %cst_5 = arith.constant 1.000000e+00 : f32
    %9 = vector.broadcast %cst_5 : f32 to vector<16x128xf32>
    %10 = arith.addf %6, %9 : vector<16x128xf32>
    %11 = arith.select %5, %10, %6 : vector<16x128xi1>, vector<16x128xf32>
    %c0_6 = arith.constant 0 : index
    %c0_7 = arith.constant 0 : index
    %12 = vector.load %arg6[%c0_6, %c0_7] : memref<8x128xf32, #tpu.memory_space<vmem>>, vector<8x128xf32>
    %13 = vector.shape_cast %8 : vector<16x128xf32> to vector<2x8x128xf32>
    %cst_8 = arith.constant dense<0.000000e+00> : vector<8x128xf32>
    %14 = vector.multi_reduction <add>, %13, %cst_8 [0] : vector<2x8x128xf32> to vector<8x128xf32>
    %15 = arith.addf %12, %14 : vector<8x128xf32>
    %c0_9 = arith.constant 0 : index
    %c0_10 = arith.constant 0 : index
    %16 = vector.load %arg6[%c0_9, %c0_10] : memref<8x128xf32, #tpu.memory_space<vmem>>, vector<8x128xf32>
    tpu.vector_store %arg6[%c0_9, %c0_10], %15 {strides = array<i32>} : memref<8x128xf32, #tpu.memory_space<vmem>>, vector<8x128xf32>,
    %c0_11 = arith.constant 0 : index
    %c0_12 = arith.constant 0 : index
    %17 = vector.load %arg7[%c0_11, %c0_12] : memref<8x128xf32, #tpu.memory_space<vmem>>, vector<8x128xf32>
    %18 = vector.shape_cast %11 : vector<16x128xf32> to vector<2x8x128xf32>
    %cst_13 = arith.constant dense<0.000000e+00> : vector<8x128xf32>
    %19 = vector.multi_reduction <add>, %18, %cst_13 [0] : vector<2x8x128xf32> to vector<8x128xf32>
    %20 = arith.addf %17, %19 : vector<8x128xf32>
    %c0_14 = arith.constant 0 : index
    %c0_15 = arith.constant 0 : index
    %21 = vector.load %arg7[%c0_14, %c0_15] : memref<8x128xf32, #tpu.memory_space<vmem>>, vector<8x128xf32>
    tpu.vector_store %arg7[%c0_14, %c0_15], %20 {strides = array<i32>} : memref<8x128xf32, #tpu.memory_space<vmem>>, vector<8x128xf32>,
    %c0_i32_16 = arith.constant 0 : i32
    %22 = arith.cmpi eq, %arg1, %c0_i32_16 : i32
    %23 = arith.extui %22 : i1 to i32
    %c0_i32_17 = arith.constant 0 : i32
    %24 = arith.cmpi ne, %23, %c0_i32_17 : i32
    scf.if %24 {
      %c0_18 = arith.constant 0 : index
      %c0_19 = arith.constant 0 : index
      %25 = vector.load %arg6[%c0_18, %c0_19] : memref<8x128xf32, #tpu.memory_space<vmem>>, vector<8x128xf32>
      %26 = vector.shape_cast %25 : vector<8x128xf32> to vector<1x8x128xf32>
      %c0_20 = arith.constant 0 : index
      %c0_21 = arith.constant 0 : index
      %c0_22 = arith.constant 0 : index
      %27 = vector.load %arg4[%c0_20, %c0_21, %c0_22] : memref<1x8x128xf32, #tpu.memory_space<vmem>>, vector<1x8x128xf32>
      tpu.vector_store %arg4[%c0_20, %c0_21, %c0_22], %26 {strides = array<i32>} : memref<1x8x128xf32, #tpu.memory_space<vmem>>, vector<1x8x128xf32>,
      %c0_23 = arith.constant 0 : index
      %c0_24 = arith.constant 0 : index
      %28 = vector.load %arg7[%c0_23, %c0_24] : memref<8x128xf32, #tpu.memory_space<vmem>>, vector<8x128xf32>
      %29 = vector.shape_cast %28 : vector<8x128xf32> to vector<1x8x128xf32>
      %c0_25 = arith.constant 0 : index
      %c0_26 = arith.constant 0 : index
      %c0_27 = arith.constant 0 : index
      %30 = vector.load %arg5[%c0_25, %c0_26, %c0_27] : memref<1x8x128xf32, #tpu.memory_space<vmem>>, vector<1x8x128xf32>
      tpu.vector_store %arg5[%c0_25, %c0_26, %c0_27], %29 {strides = array<i32>} : memref<1x8x128xf32, #tpu.memory_space<vmem>>, vector<1x8x128xf32>,
    } else {
    }
    return
  }
  func.func @transform_0(%arg0: i32, %arg1: i32) -> (i32, i32) {
    %c1_i32 = arith.constant 1 : i32
    %0 = arith.muli %arg0, %c1_i32 : i32
    %1 = arith.addi %0, %arg1 : i32
    %c0_i32 = arith.constant 0 : i32
    %c0_i32_0 = arith.constant 0 : i32
    return %1, %c0_i32 : i32, i32
  }
  func.func @transform_1(%arg0: i32, %arg1: i32) -> (i32, i32) {
    %c1_i32 = arith.constant 1 : i32
    %0 = arith.muli %arg0, %c1_i32 : i32
    %1 = arith.addi %0, %arg1 : i32
    %c0_i32 = arith.constant 0 : i32
    %c0_i32_0 = arith.constant 0 : i32
    return %1, %c0_i32 : i32, i32
  }
  func.func @transform_2(%arg0: i32, %arg1: i32) -> (i32, i32, i32) {
    %c0_i32 = arith.constant 0 : i32
    %c0_i32_0 = arith.constant 0 : i32
    %c0_i32_1 = arith.constant 0 : i32
    return %arg0, %c0_i32, %c0_i32_0 : i32, i32, i32
  }
  func.func @transform_3(%arg0: i32, %arg1: i32) -> (i32, i32, i32) {
    %c0_i32 = arith.constant 0 : i32
    %c0_i32_0 = arith.constant 0 : i32
    %c0_i32_1 = arith.constant 0 : i32
    return %arg0, %c0_i32, %c0_i32_0 : i32, i32, i32
  }
}

</mosaic_0001>

<bundles_post_ra>
// kernel: tpu_custom_call.1
= control target key start
LH: loop header
LB: loop body
LE: loop exit
PB: predicated region body
PF: predicated region fallthrough
CT: control target
= control target key end

     0   :  { %9 = vsyncpa [#allocation5], 0  ;;  %s294_s0 = inlined_call_operand.hbm [shape: f32[16,128], index: 0, kind: input, shape index: {}]   ;;  %s295_s1 = inlined_call_operand.hbm [shape: f32[16,128], index: 1, kind: input, shape index: {}]   ;;  %s296_s2 = inlined_call_operand.hbm [shape: f32[1,8,128], index: 2, kind: output, shape index: {0}]   ;;  %s297_s3 = inlined_call_operand.hbm [shape: f32[1,8,128], index: 3, kind: output, shape index: {1}]  }
   0x1   :  { %10 = vsyncpa [#allocation8], 0 }
   0x2   :  { %11 = vsyncpa [#allocation6], 0 }
   0x3   :  { %12 = vsyncpa [#allocation11], 0  ;;  %s220_s12 = smov [#allocation4]   ;;  %s124_s16 = scalar_lea.hbm %s294_s0, 256 }
   0x4   :  { %s22_s13 = sshll.u32 %s220_s12, 4  ;;  %p125_p0 = scmp.ne.s32.totalorder %s294_s0, %s124_s16  ;;  %s23_s13 = int_to_ptr.vmem [resolvable:$true] %s22_s13 }
   0x5   :  { %p128_p1 = scmp.lt.u32.totalorder %s124_s16, %s294_s0 }
   0x7   :  { %p130_p2 = pnand %p128_p1, %p125_p0 }
   0x9   :  { %133 = shalt.err (!%p130_p2)
}
   0xa   :  { %s134_s21 = scalar_lea.vmem %s23_s13, 256  ;;  %p139_p4 = scmp.lt.s32.totalorder %s23_s13, %s23_s13 }
   0xb   :  { %p135_p3 = scmp.ne.s32.totalorder %s23_s13, %s134_s21  ;;  %p140_p5 = scmp.lt.s32.totalorder %s134_s21, %s134_s21 }
   0xd   :  { %p141_p6 = por %p140_p5, %p139_p4 }
   0xf   :  { %p142_p7 = pnand %p141_p6, %p135_p3 }
  0x11   :  { %145 = shalt.err (!%p142_p7)
}
  0x12   :  { %s221_s22 = smov 128   ;;  %s222_s23 = smov 8  }
  0x13   :  { %28 = dma.hbm_to_vmem [thread:$0]  %s294_s0, 256, %s23_s13, [#allocation5], %s221_s22, %s221_s22, %s222_s23  }
  0x14   :  { %s223_s26 = smov [#allocation7]   ;;  %s146_s30 = scalar_lea.hbm %s295_s1, 256 }
  0x15   :  { %s38_s27 = sshll.u32 %s223_s26, 4  ;;  %p147_p8 = scmp.ne.s32.totalorder %s295_s1, %s146_s30  ;;  %s39_s27 = int_to_ptr.vmem [resolvable:$true] %s38_s27 }
  0x16   :  { %p150_p9 = scmp.lt.u32.totalorder %s146_s30, %s295_s1 }
  0x18   :  { %p152_p10 = pnand %p150_p9, %p147_p8 }
  0x1a   :  { %155 = shalt.err (!%p152_p10)
}
  0x1b   :  { %s156_s8 = scalar_lea.vmem %s39_s27, 256  ;;  %p161_p12 = scmp.lt.s32.totalorder %s39_s27, %s39_s27 }
  0x1c   :  { %p157_p11 = scmp.ne.s32.totalorder %s39_s27, %s156_s8  ;;  %p162_p13 = scmp.lt.s32.totalorder %s156_s8, %s156_s8 }
  0x1e   :  { %p163_p0 = por %p162_p13, %p161_p12 }
  0x20   :  { %p164_p1 = pnand %p163_p0, %p157_p11 }
  0x22   :  { %167 = shalt.err (!%p164_p1)
}
  0x23   :  { %44 = dma.hbm_to_vmem [thread:$0]  %s295_s1, 256, %s39_s27, [#allocation8], %s221_s22, %s221_s22, %s222_s23  }
  0x24   :  { %212 = dma.done.wait [#allocation5], 256  }
  0x25   :  { %213 = vsyncadd [#allocation5], 4294967040 }
  0x26   :  { %214 = dma.done.wait [#allocation8], 256  }
  0x27   :  { %215 = vsyncadd [#allocation8], 4294967040  ;;  %v61_v0 = vld [vmem:[#allocation4] sm:$0xff]  ;;  %v62_v1 = vld [vmem:[#allocation4 + $0x8] sm:$0xff]  ;;  %s224_s10 = smov [#allocation9]   ;;  %s225_s12 = smov [#allocation10]  }
  0x28   :  { %v65_v2 = vld [vmem:[#allocation7] sm:$0xff]  ;;  %s94_s11 = sshll.u32 %s224_s10, 4  ;;  %vm63_vm0 = vcmp.gt.f32.partialorder %v61_v0, 0.5  ;;  %vm64_vm1 = vcmp.gt.f32.partialorder %v62_v1, 0.5  ;;  %v66_v3 = vld [vmem:[#allocation7 + $0x8] sm:$0xff]  ;;  %s104_s13 = sshll.u32 %s225_s12, 4  ;;  %s95_s11 = int_to_ptr.vmem [resolvable:$true] %s94_s11  ;;  %s105_s13 = int_to_ptr.vmem [resolvable:$true] %s104_s13 }
  0x29   :  { %v69_v4 = vadd.f32 1.0, %v65_v2  ;;  %v67_v5 = vsel %vm63_vm0, %v65_v2, 0.0  ;;  %v68_v6 = vsel %vm64_vm1, %v66_v3, 0.0  ;;  %v70_v7 = vadd.f32 1.0, %v66_v3  ;;  %s168_s1 = scalar_lea.vmem %s95_s11, 128  ;;  %p173_p3 = scmp.lt.s32.totalorder %s95_s11, %s95_s11 }
  0x2a   :  { %v74_v8 = vadd.f32 %v68_v6, %v67_v5  ;;  %p169_p2 = scmp.ne.s32.totalorder %s95_s11, %s168_s1  ;;  %p174_p4 = scmp.lt.s32.totalorder %s168_s1, %s168_s1 }
  0x2b   :  { %v71_v9 = vsel %vm63_vm0, %v69_v4, %v65_v2  ;;  %v72_v10 = vsel %vm64_vm1, %v70_v7, %v66_v3 }
  0x2c   :  { %85 = vst [vmem:[#allocation9] sm:$0xff] %v74_v8  ;;  %v78_v11 = vadd.f32 %v72_v10, %v71_v9  ;;  %p175_p5 = por %p174_p4, %p173_p3 }
  0x2e   :  { %p176_p6 = pnand %p175_p5, %p169_p2 }
  0x30   :  { %179 = shalt.err (!%p176_p6)
}
  0x31   :  { %s180_s16 = scalar_lea.hbm %s296_s2, 128 }
  0x32   :  { %p181_p7 = scmp.ne.s32.totalorder %s296_s2, %s180_s16  ;;  %p184_p8 = scmp.lt.u32.totalorder %s180_s16, %s296_s2 }
  0x34   :  { %p186_p9 = pnand %p184_p8, %p181_p7 }
  0x36   :  { %189 = shalt.err (!%p186_p9)
}
  0x37   :  { %97 = dma.vmem_to_hbm [thread:$0]  %s95_s11, 128, %s296_s2, [#allocation6]   ;;  %87 = vst [vmem:[#allocation10] sm:$0xff] %v78_v11 }
  0x38   :  { %s190_s23 = scalar_lea.vmem %s105_s13, 128  ;;  %p195_p11 = scmp.lt.s32.totalorder %s105_s13, %s105_s13 }
  0x39   :  { %p191_p10 = scmp.ne.s32.totalorder %s105_s13, %s190_s23  ;;  %p196_p12 = scmp.lt.s32.totalorder %s190_s23, %s190_s23 }
  0x3b   :  { %p197_p13 = por %p196_p12, %p195_p11 }
  0x3d   :  { %p198_p0 = pnand %p197_p13, %p191_p10 }
  0x3f   :  { %201 = shalt.err (!%p198_p0)
}
  0x40   :  { %s202_s26 = scalar_lea.hbm %s297_s3, 128 }
  0x41   :  { %p203_p1 = scmp.ne.s32.totalorder %s297_s3, %s202_s26  ;;  %p206_p2 = scmp.lt.u32.totalorder %s202_s26, %s297_s3 }
  0x43   :  { %p208_p3 = pnand %p206_p2, %p203_p1 }
  0x45   :  { %211 = shalt.err (!%p208_p3)
}
  0x46   :  { %107 = dma.vmem_to_hbm [thread:$0]  %s105_s13, 128, %s297_s3, [#allocation11]  }
  0x47   :  { %216 = dma.done.wait [#allocation6], 128  }
  0x48   :  { %217 = vsyncadd [#allocation6], 4294967168 }
  0x49   :  { %218 = dma.done.wait [#allocation11], 128  }
  0x4a   :  { %219 = vsyncadd [#allocation11], 4294967168 }
  0x4b   :  { %114 = vsyncpa [#allocation5], 1 }
  0x4c   :  { %115 = vsyncpa [#allocation8], 1 }
  0x4d   :  { %116 = vsyncpa [#allocation6], 1 }
  0x4e   :  { %117 = vsyncpa [#allocation11], 1 }

</bundles_post_ra>
